<compile_context>
chip_gen: v6e
topology: v6e:2x2x1
jax: 0.10.0
libtpu: 0.0.40
codegen_flags: <defaults>
</compile_context>

<pallas_src>
import functools

import jax
import jax.numpy as jnp
from jax.experimental import pallas as pl
from jax.experimental.pallas import tpu as pltpu


def _round_up(x, m):
    return (x + m - 1) // m * m


def _sublane(dtype):
    # native sublane packing: 8 for 4-byte, 16 for 2-byte, 32 for 1-byte dtypes
    return max(8, 32 // jnp.dtype(dtype).itemsize)


def _vmem_capacity_bytes():
    try:
        info = pltpu.get_tpu_info()
        for name in ("vmem_capacity_bytes", "vmem_bytes", "vmem_size_bytes"):
            cap = getattr(info, name, None)
            if cap:
                return int(cap)
    except Exception:
        pass
    return 128 * 1024 * 1024  # v5e/v6e default


def _default_tiles(vmem_cap):
    kind = ""
    try:
        kind = jax.devices()[0].device_kind.lower()
    except Exception:
        pass
    if vmem_cap <= 64 * 1024 * 1024:
        # v7x: 64 MiB per-TC VMEM, 2 TCs, only ~310 flops/byte needed.
        return 512, 512, 1024
    if "v5" in kind:
        # v5e: ~240 flops/byte, single vst slot -> modest tm/tn, large tk.
        return 512, 512, 1024
    # v6e (and default): needs the highest arithmetic intensity -> big tiles.
    return 1024, 1024, 1024


def _divisor_tile(total, target):
    """Largest multiple of 128 that divides `total` and is <= target."""
    t = max(128, (min(target, total) // 128) * 128)
    while total % t:
        t -= 128
    return t


# ---------------------------------------------------------------------------
# Kernel 1 (one-time, off the hot path):
#   w_nn = ELU(w) + 1 == where(w > 0, w + 1, exp(w)),
#   emitted transposed (k, n) in the MXU feed dtype; padded d_in rows zeroed.
# ---------------------------------------------------------------------------
def _weight_transform_kernel(w_ref, o_ref, *, d_in, tk):
    w = w_ref[...].astype(jnp.float32)                       # (tn_t, tk_t)
    w_nn = jnp.where(w > 0.0, w + 1.0, jnp.exp(w))
    w_nn_t = w_nn.T                                          # (tk_t, tn_t), one-time XLU
    k0 = pl.program_id(1) * tk
    kk = k0 + jax.lax.broadcasted_iota(jnp.int32, w_nn_t.shape, 0)
    w_nn_t = jnp.where(kk < d_in, w_nn_t, 0.0)               # zero padded d_in rows
    o_ref[...] = w_nn_t.astype(o_ref.dtype)


def _transform_weight(w_padded, d_in, feed_dtype):
    n_pad, k_pad = w_padded.shape
    tn_t = _divisor_tile(n_pad, 512)
    tk_t = _divisor_tile(k_pad, 512)
    kern = functools.partial(_weight_transform_kernel, d_in=d_in, tk=tk_t)
    return pl.pallas_call(
        kern,
        out_shape=jax.ShapeDtypeStruct((k_pad, n_pad), feed_dtype),
        grid=(n_pad // tn_t, k_pad // tk_t),
        in_specs=[pl.BlockSpec((tn_t, tk_t), lambda i, j: (i, j))],
        out_specs=pl.BlockSpec((tk_t, tn_t), lambda i, j: (j, i)),
        compiler_params=pltpu.CompilerParams(
            dimension_semantics=("parallel", "parallel"),
        ),
    )(w_padded)


def _pad_and_transform(x2, weight_raw, m_pad, k_pad, n_pad, feed_dtype):
    m, d_in = x2.shape
    d_out = weight_raw.shape[0]
    # Pad only when actually needed (skips an extra HBM round trip of x).
    # TODO(synk): mask a ragged M edge in-kernel instead of padding x when only
    # the batch dim is unaligned.
    x_p = x2 if (m_pad, k_pad) == (m, d_in) else jnp.pad(
        x2, ((0, m_pad - m), (0, k_pad - d_in)))
    w_p = weight_raw if (n_pad, k_pad) == (d_out, d_in) else jnp.pad(
        weight_raw, ((0, n_pad - d_out), (0, k_pad - d_in)))
    w_nn_t = _transform_weight(w_p, d_in, feed_dtype)        # (k_pad, n_pad)
    return x_p, w_nn_t


# ---------------------------------------------------------------------------
# Kernel 2 (hot path): y = x @ w_nn_T, f32 accumulation on the MXU
# ---------------------------------------------------------------------------
def _matmul_kernel(x_ref, w_ref, o_ref, acc_ref):
    @pl.when(pl.program_id(2) == 0)
    def _():
        acc_ref[...] = jnp.zeros_like(acc_ref)

    acc_ref[...] += jnp.dot(x_ref[...], w_ref[...],
                            preferred_element_type=jnp.float32)

    @pl.when(pl.program_id(2) == pl.num_programs(2) - 1)
    def _():
        o_ref[...] = acc_ref[...].astype(o_ref.dtype)


def _matmul_kernel_wresident(x_ref, w_ref, o_ref):
    o_ref[...] = jnp.dot(x_ref[...], w_ref[...],
                         preferred_element_type=jnp.float32).astype(o_ref.dtype)


# ---------------------------------------------------------------------------
# Wrapper
# ---------------------------------------------------------------------------
def bidir_nonneg_linear_forward(x, weight_raw, *, tm=None, tn=None, tk=None,
                                allow_fast_path=True):
    """x: (..., d_in), weight_raw: (d_out, d_in) -> (..., d_out)."""
    orig_shape = x.shape
    d_in = orig_shape[-1]
    d_out, d_in_w = weight_raw.shape
    assert d_in == d_in_w, "feature-dim mismatch"

    x2 = x.reshape(-1, d_in)
    m = x2.shape[0]

    feed_dtype = x.dtype          # MXU feed dtype (weights cast to this)
    x_item = jnp.dtype(feed_dtype).itemsize
    o_item = x_item
    sub = _sublane(feed_dtype)

    vmem_cap = _vmem_capacity_bytes()
    vmem_budget = vmem_cap * 3 // 4           # leave headroom (esp. v7x 64 MiB)
    is_megacore = vmem_cap <= 64 * 1024 * 1024  # v7x heuristic: 2 TCs/chip

    dtm, dtn, dtk = _default_tiles(vmem_cap)
    tm = dtm if tm is None else tm
    tn = dtn if tn is None else tn
    tk = dtk if tk is None else tk

    n_min = _round_up(d_out, 128)             # lane-dense output
    k_min = _round_up(d_in, 128)
    w_bytes = n_min * k_min * x_item

    use_fast = (
        allow_fast_path
        and 2 * w_bytes <= vmem_budget // 2                       # weight resident
        and 2 * w_bytes + 2 * sub * (k_min + n_min) * x_item <= vmem_budget
    )

    if use_fast:
        # ---- weight-resident fast path: grid over M only --------------------
        n_pad, k_pad = n_min, k_min
        tm_f = _round_up(max(sub, min(tm, _round_up(m, sub))), sub)
        while tm_f > sub and (2 * w_bytes
                              + 2 * tm_f * (k_pad * x_item + n_pad * o_item)
                              ) > vmem_budget:
            tm_f = max(sub, _round_up(tm_f // 2, sub))
        tm = tm_f
        m_pad = _round_up(m, tm)
        if is_megacore and m_pad // tm < 2 and m_pad >= 2 * sub:
            tm = _round_up((m_pad + 1) // 2, sub)   # keep both v7x TCs busy
            m_pad = _round_up(m, tm)

        x_p, w_nn_t = _pad_and_transform(x2, weight_raw, m_pad, k_pad, n_pad,
                                         feed_dtype)

        vmem_needed = (2 * w_bytes + 2 * tm * k_pad * x_item
                       + 2 * tm * n_pad * o_item)
        vmem_limit = int(min(vmem_budget,
                             max(vmem_needed + (4 << 20), 16 << 20)))
        cost = pl.CostEstimate(
            flops=2 * m_pad * n_pad * k_pad, transcendentals=0,
            bytes_accessed=m_pad * k_pad * x_item + k_pad * n_pad * x_item
            + m_pad * n_pad * o_item)

        out = pl.pallas_call(
            _matmul_kernel_wresident,
            out_shape=jax.ShapeDtypeStruct((m_pad, n_pad), x.dtype),
            grid=(m_pad // tm,),
            in_specs=[
                pl.BlockSpec((tm, k_pad), lambda i: (i, 0)),
                pl.BlockSpec((k_pad, n_pad), lambda i: (0, 0)),  # DMA'd once
            ],
            out_specs=pl.BlockSpec((tm, n_pad), lambda i: (i, 0)),
            compiler_params=pltpu.CompilerParams(
                dimension_semantics=("parallel",),
                vmem_limit_bytes=vmem_limit,
            ),
            cost_estimate=cost,
        )(x_p, w_nn_t)
    else:
        # ---- general tiled path: grid (M, N, K), K last + accumulator -------
        tm = _round_up(max(sub, min(tm, _round_up(m, sub))), sub)
        tn = _round_up(max(128, min(tn, n_min)), 128)
        tk = _round_up(max(128, min(tk, k_min)), 128)

        def _needed(tm_, tn_, tk_):
            return (2 * tm_ * tk_ * x_item      # x tiles (double-buffered)
                    + 2 * tk_ * tn_ * x_item    # weight tiles
                    + 2 * tm_ * tn_ * o_item    # output tiles
                    + tm_ * tn_ * 4)            # f32 accumulator

        while _needed(tm, tn, tk) > vmem_budget:
            if tm >= max(tn, tk) and tm > sub:
                tm = max(sub, _round_up(tm // 2, sub))
            elif tk >= tn and tk > 128:
                tk = max(128, _round_up(tk // 2, 128))
            elif tn > 128:
                tn = max(128, _round_up(tn // 2, 128))
            elif tm > sub:
                tm = max(sub, _round_up(tm // 2, sub))
            elif tk > 128:
                tk = max(128, _round_up(tk // 2, 128))
            else:
                break

        m_pad = _round_up(m, tm)
        n_pad = _round_up(d_out, tn)
        k_pad = _round_up(d_in, tk)

        if (is_megacore and (m_pad // tm) * (n_pad // tn) < 2
                and m_pad >= 2 * sub):
            tm = _round_up((m_pad + 1) // 2, sub)   # keep both v7x TCs busy
            m_pad = _round_up(m, tm)

        x_p, w_nn_t = _pad_and_transform(x2, weight_raw, m_pad, k_pad, n_pad,
                                         feed_dtype)

        gi, gj, gk = m_pad // tm, n_pad // tn, k_pad // tk
        vmem_limit = int(min(vmem_budget,
                             max(_needed(tm, tn, tk) + (4 << 20), 16 << 20)))
        cost = pl.CostEstimate(
            flops=2 * m_pad * n_pad * k_pad, transcendentals=0,
            bytes_accessed=m_pad * k_pad * x_item * gj     # x re-read per j
            + k_pad * n_pad * x_item * gi                  # w re-read per i
            + m_pad * n_pad * o_item)

        out = pl.pallas_call(
            _matmul_kernel,
            out_shape=jax.ShapeDtypeStruct((m_pad, n_pad), x.dtype),
            grid=(gi, gj, gk),
            in_specs=[
                pl.BlockSpec((tm, tk), lambda i, j, k: (i, k)),
                pl.BlockSpec((tk, tn), lambda i, j, k: (k, j)),
            ],
            out_specs=pl.BlockSpec((tm, tn), lambda i, j, k: (i, j)),
            scratch_shapes=[pltpu.VMEM((tm, tn), jnp.float32)],
            compiler_params=pltpu.CompilerParams(
                dimension_semantics=("parallel", "parallel", "arbitrary"),
                vmem_limit_bytes=vmem_limit,
            ),
            cost_estimate=cost,
        )(x_p, w_nn_t)

    out = out[:m, :d_out]
    return out.reshape(*orig_shape[:-1], d_out)


def reference_forward(x, weight_raw):
    w_nn = jnp.where(weight_raw > 0.0, weight_raw + 1.0, jnp.exp(weight_raw))
    return jnp.einsum("...k,nk->...n", x, w_nn,
                      precision=jax.lax.Precision.HIGHEST)


if __name__ == "__main__":
    key = jax.random.PRNGKey(0)
    k_x, k_w, k_x2, k_w2 = jax.random.split(key, 4)

    # ---- case 1: toy shapes matching the module (weight-resident fast path) --
    batch, d_in, d_out = 8, 32, 16
    weight_raw = jax.random.normal(k_w, (d_out, d_in), dtype=jnp.float32) - 2.0
    shift = jnp.zeros((1, d_in), dtype=jnp.float32)  # parameter parity; unused in forward()
    x = jax.random.normal(k_x, (batch, d_in), dtype=jnp.float32)

    out = jax.block_until_ready(bidir_nonneg_linear_forward(x, weight_raw))
    ref = reference_forward(x, weight_raw)
    assert out.shape == (batch, d_out)
    assert jnp.allclose(out, ref, atol=1e-3, rtol=1e-3), "mismatch (case 1)"

    # ---- case 2: leading batch dims + ragged shapes, forced K-loop path ------
    b0, b1, d_in2, d_out2 = 65, 3, 200, 170
    weight_raw2 = jax.random.normal(k_w2, (d_out2, d_in2), dtype=jnp.float32) - 2.0
    x2 = jax.random.normal(k_x2, (b0, b1, d_in2), dtype=jnp.float32)

    out2 = jax.block_until_ready(
        bidir_nonneg_linear_forward(x2, weight_raw2, tm=64, tn=128, tk=128,
                                    allow_fast_path=False))
    ref2 = reference_forward(x2, weight_raw2)
    assert out2.shape == (b0, b1, d_out2)
    assert jnp.allclose(out2, ref2, atol=1e-3, rtol=1e-3), "mismatch (case 2)"

    print("KERNEL_OK")
</pallas_src>

<mosaic_0001>
module attributes {stable_mosaic.version = 11 : i64} {
  func.func @_weight_transform_kernel(%arg0: i32, %arg1: i32, %arg2: memref<128x128xf32, #tpu.memory_space<vmem>>, %arg3: memref<128x128xf32, #tpu.memory_space<vmem>>) attributes {dimension_semantics = [#tpu.dimension_semantics<parallel>, #tpu.dimension_semantics<parallel>], iteration_bounds = array<i64: 1, 1>, scalar_prefetch = 0 : i64, scratch_operands = 0 : i64, tpu.core_type = #tpu.core_type<tc>, window_params = [{transform_indices = @transform_0, window_bounds = array<i64: 128, 128>}, {transform_indices = @transform_1, window_bounds = array<i64: 128, 128>}]} {
    %c0 = arith.constant 0 : index
    %c0_0 = arith.constant 0 : index
    %0 = vector.load %arg2[%c0, %c0_0] : memref<128x128xf32, #tpu.memory_space<vmem>>, vector<128x128xf32>
    %cst = arith.constant 0.000000e+00 : f32
    %1 = vector.broadcast %cst : f32 to vector<128x128xf32>
    %2 = arith.cmpf ogt, %0, %1 : vector<128x128xf32>
    %cst_1 = arith.constant 1.000000e+00 : f32
    %3 = vector.broadcast %cst_1 : f32 to vector<128x128xf32>
    %4 = arith.addf %0, %3 : vector<128x128xf32>
    %5 = math.exp %0 : vector<128x128xf32>
    %6 = arith.select %2, %4, %5 : vector<128x128xi1>, vector<128x128xf32>
    %7 = tpu.transpose %6, [1, 0] : vector<128x128xf32> -> vector<128x128xf32>
    %c128_i32 = arith.constant 128 : i32
    %8 = arith.muli %arg1, %c128_i32 : i32
    %9 = tpu.iota {dimensions = array<i32: 0>} : vector<128x128xi32>
    %10 = vector.broadcast %8 : i32 to vector<128x128xi32>
    %11 = arith.addi %10, %9 : vector<128x128xi32>
    %c32_i32 = arith.constant 32 : i32
    %12 = vector.broadcast %c32_i32 : i32 to vector<128x128xi32>
    %13 = arith.cmpi slt, %11, %12 : vector<128x128xi32>
    %cst_2 = arith.constant 0.000000e+00 : f32
    %14 = vector.broadcast %cst_2 : f32 to vector<128x128xf32>
    %15 = arith.select %13, %7, %14 : vector<128x128xi1>, vector<128x128xf32>
    %c0_3 = arith.constant 0 : index
    %c0_4 = arith.constant 0 : index
    %16 = vector.load %arg3[%c0_3, %c0_4] : memref<128x128xf32, #tpu.memory_space<vmem>>, vector<128x128xf32>
    tpu.vector_store %arg3[%c0_3, %c0_4], %15 {strides = array<i32>} : memref<128x128xf32, #tpu.memory_space<vmem>>, vector<128x128xf32>,
    return
  }
  func.func @transform_0(%arg0: i32, %arg1: i32) -> (i32, i32) {
    %c0_i32 = arith.constant 0 : i32
    return %arg0, %arg1 : i32, i32
  }
  func.func @transform_1(%arg0: i32, %arg1: i32) -> (i32, i32) {
    %c0_i32 = arith.constant 0 : i32
    return %arg1, %arg0 : i32, i32
  }
}

</mosaic_0001>

<bundles_post_ra>
// kernel: tpu_custom_call.1
= control target key start
LH: loop header
LB: loop body
LE: loop exit
PB: predicated region body
PF: predicated region fallthrough
CT: control target
= control target key end

     0   :  { %6 = vsyncpa [#allocation3], 0  ;;  %s359_s0 = inlined_call_operand.hbm [shape: f32[128,128], index: 0, kind: input, shape index: {}]   ;;  %s360_s1 = inlined_call_operand.hbm [shape: f32[128,128], index: 1, kind: output, shape index: {}]  }
   0x1   :  { %7 = vsyncpa [#allocation4], 0  ;;  %s332_s6 = smov [#allocation2]  }
   0x2   :  { %s13_s7 = sshll.u32 %s332_s6, 4  ;;  %s14_s7 = int_to_ptr.vmem [resolvable:$true] %s13_s7 }
   0x3   :  { %s296_s8 = scalar_lea.vmem %s14_s7, 2048  ;;  %p301_p1 = scmp.lt.s32.totalorder %s14_s7, %s14_s7 }
   0x4   :  { %p297_p0 = scmp.ne.s32.totalorder %s14_s7, %s296_s8  ;;  %p302_p2 = scmp.lt.s32.totalorder %s296_s8, %s296_s8 }
   0x6   :  { %p303_p3 = por %p302_p2, %p301_p1 }
   0x8   :  { %p304_p4 = pnand %p303_p3, %p297_p0 }
   0xa   :  { %307 = shalt.err (!%p304_p4)
}
   0xb   :  { %s333_s9 = smov 128   ;;  %s334_s10 = smov 8  }
   0xc   :  { %19 = dma.hbm_to_vmem [thread:$0]  %s359_s0, 2048, %s14_s7, [#allocation3], %s333_s9, %s333_s9, %s334_s10  }
   0xd   :  { %328 = dma.done.wait [#allocation3], 2048  }
   0xe   :  { %329 = vsyncadd [#allocation3], 4294965248  ;;  %v23_v0 = vld [vmem:[#allocation2] sm:$0xff]  ;;  %v24_v1 = vld [vmem:[#allocation2 + $0x8] sm:$0xff]  ;;  %v335_v31 = vmov 0.0   ;;  %s336_s0 = smov [#allocation5]  }
   0xf   :  { %v25_v2 = vld [vmem:[#allocation2 + $0x10] sm:$0xff]  ;;  %v71_v3 = vmul.f32 1.442695, %v23_v0  ;;  %v73_v4 = vmul.f32 1.442695, %v24_v1  ;;  %v26_v6 = vld [vmem:[#allocation2 + $0x18] sm:$0xff] }
  0x10   :  { %v75_v5 = vmul.f32 1.442695, %v25_v2  ;;  %v77_v7 = vmul.f32 1.442695, %v26_v6  ;;  %v27_v8 = vld [vmem:[#allocation2 + $0x20] sm:$0xff]  ;;  %v28_v10 = vld [vmem:[#allocation2 + $0x28] sm:$0xff] }
  0x11   :  { %256 = vpow2.f32 %v71_v3  ;;  %v79_v9 = vmul.f32 1.442695, %v27_v8  ;;  %v55_v11 = vadd.f32 1.0, %v23_v0  ;;  %vm39_vm0 = vcmp.gt.f32.partialorder %v23_v0, 0.0  ;;  %v29_v15 = vld [vmem:[#allocation2 + $0x30] sm:$0xff]  ;;  %v30_v22 = vld [vmem:[#allocation2 + $0x38] sm:$0xff] }
  0x12   :  { %258 = vpow2.f32 %v73_v4  ;;  %v56_v12 = vadd.f32 1.0, %v24_v1  ;;  %v81_v13 = vmul.f32 1.442695, %v28_v10  ;;  %vm40_vm1 = vcmp.gt.f32.partialorder %v24_v1, 0.0  ;;  %v31_v27 = vld [vmem:[#allocation2 + $0x40] sm:$0xff]  ;;  %222 = vst [vmem:[#allocation5 + $0x20] sm:$0xff] %v335_v31 }
  0x13   :  { %260 = vpow2.f32 %v75_v5  ;;  %v57_v19 = vadd.f32 1.0, %v25_v2  ;;  %v83_v20 = vmul.f32 1.442695, %v29_v15  ;;  %vm41_vm2 = vcmp.gt.f32.partialorder %v25_v2, 0.0  ;;  %223 = vst [vmem:[#allocation5 + $0x28] sm:$0xff] %v335_v31  ;;  %224 = vst [vmem:[#allocation5 + $0x30] sm:$0xff] %v335_v31 }
  0x14   :  { %262 = vpow2.f32 %v77_v7  ;;  %v58_v24 = vadd.f32 1.0, %v26_v6  ;;  %v85_v25 = vmul.f32 1.442695, %v30_v22  ;;  %vm42_vm3 = vcmp.gt.f32.partialorder %v26_v6, 0.0  ;;  %225 = vst [vmem:[#allocation5 + $0x38] sm:$0xff] %v335_v31  ;;  %226 = vst [vmem:[#allocation5 + $0x40] sm:$0xff] %v335_v31 }
  0x15   :  { %264 = vpow2.f32 %v79_v9  ;;  %v59_v29 = vadd.f32 1.0, %v27_v8  ;;  %v87_v30 = vmul.f32 1.442695, %v31_v27  ;;  %227 = vst [vmem:[#allocation5 + $0x48] sm:$0xff] %v335_v31  ;;  %228 = vst [vmem:[#allocation5 + $0x50] sm:$0xff] %v335_v31  ;;  %vm43_vm4 = vcmp.gt.f32.partialorder %v27_v8, 0.0 }
  0x16   :  { %266 = vpow2.f32 %v81_v13  ;;  %229 = vst [vmem:[#allocation5 + $0x58] sm:$0xff] %v335_v31  ;;  %230 = vst [vmem:[#allocation5 + $0x60] sm:$0xff] %v335_v31  ;;  %v32_v33 = vld [vmem:[#allocation2 + $0x48] sm:$0xff]  ;;  %v60_v35 = vadd.f32 1.0, %v28_v10  ;;  %vm44_vm5 = vcmp.gt.f32.partialorder %v28_v10, 0.0  ;;  %v33_v38 = vld [vmem:[#allocation2 + $0x50] sm:$0xff] }
  0x17   :  { %268 = vpow2.f32 %v83_v20  ;;  %231 = vst [vmem:[#allocation5 + $0x68] sm:$0xff] %v335_v31  ;;  %232 = vst [vmem:[#allocation5 + $0x70] sm:$0xff] %v335_v31  ;;  %v89_v36 = vmul.f32 1.442695, %v32_v33  ;;  %v61_v40 = vadd.f32 1.0, %v29_v15  ;;  %vm45_vm6 = vcmp.gt.f32.partialorder %v29_v15, 0.0 }
  0x18   :  { %270 = vpow2.f32 %v85_v25  ;;  %233 = vst [vmem:[#allocation5 + $0x78] sm:$0xff] %v335_v31  ;;  %v91_v41 = vmul.f32 1.442695, %v33_v38  ;;  %v34_v43 = vld [vmem:[#allocation2 + $0x58] sm:$0xff]  ;;  %v62_v45 = vadd.f32 1.0, %v30_v22  ;;  %vm46_vm7 = vcmp.gt.f32.partialorder %v30_v22, 0.0 }
  0x19   :  { %272 = vpow2.f32 %v87_v30  ;;  %v93_v46 = vmul.f32 1.442695, %v34_v43  ;;  %v35_v48 = vld [vmem:[#allocation2 + $0x60] sm:$0xff]  ;;  %v63_v50 = vadd.f32 1.0, %v31_v27  ;;  %vm47_vm8 = vcmp.gt.f32.partialorder %v31_v27, 0.0  ;;  %v36_v53 = vld [vmem:[#allocation2 + $0x68] sm:$0xff] }
  0x1a   :  { %274 = vpow2.f32 %v89_v36  ;;  %v95_v51 = vmul.f32 1.442695, %v35_v48  ;;  %v64_v55 = vadd.f32 1.0, %v32_v33  ;;  %v97_v56 = vmul.f32 1.442695, %v36_v53  ;;  %v37_v58 = vld [vmem:[#allocation2 + $0x70] sm:$0xff] }
  0x1b   :  { %276 = vpow2.f32 %v91_v41  ;;  %vm48_vm9 = vcmp.gt.f32.partialorder %v32_v33, 0.0  ;;  %v65_v60 = vadd.f32 1.0, %v33_v38  ;;  %v99_v61 = vmul.f32 1.442695, %v37_v58  ;;  %v38_v63 = vld [vmem:[#allocation2 + $0x78] sm:$0xff]  ;;  %s239_s13 = sshll.u32 %s336_s0, 4  ;;  %s240_s13 = int_to_ptr.vmem [resolvable:$true] %s239_s13 }
  0x1c   :  { %278 = vpow2.f32 %v93_v46  ;;  %vm49_vm10 = vcmp.gt.f32.partialorder %v33_v38, 0.0  ;;  %v66_v1 = vadd.f32 1.0, %v34_v43  ;;  %v101_v2 = vmul.f32 1.442695, %v38_v63  ;;  %s308_s14 = scalar_lea.vmem %s240_s13, 2048  ;;  %p313_p6 = scmp.lt.s32.totalorder %s240_s13, %s240_s13 }
  0x1d   :  { %280 = vpow2.f32 %v95_v51  ;;  %vm50_vm11 = vcmp.gt.f32.partialorder %v34_v43, 0.0  ;;  %v67_v5 = vadd.f32 1.0, %v35_v48  ;;  %vm51_vm12 = vcmp.gt.f32.partialorder %v35_v48, 0.0  ;;  %p309_p5 = scmp.ne.s32.totalorder %s240_s13, %s308_s14  ;;  %p314_p7 = scmp.lt.s32.totalorder %s308_s14, %s308_s14 }
  0x1e   :  { %v257_v14 = vpop.eup %256  ;;  %282 = vpow2.f32 %v97_v56  ;;  %v68_v8 = vadd.f32 1.0, %v36_v53  ;;  %vm52_vm13 = vcmp.gt.f32.partialorder %v36_v53, 0.0  ;;  %vm53_vm14 = vcmp.gt.f32.partialorder %v37_v58, 0.0 }
  0x1f   :  { %v259_v16 = vpop.eup %258  ;;  %v103_v17 = vsel %vm39_vm0, %v55_v11, %v257_v14  ;;  %284 = vpow2.f32 %v99_v61  ;;  %v69_v11 = vadd.f32 1.0, %v37_v58  ;;  %v70_v14 = vadd.f32 1.0, %v38_v63  ;;  %p315_p8 = por %p314_p7, %p313_p6 }
  0x20   :  { %119 = vxpose.xlu0.b32.start [1/16] (narrow) %v103_v17, 32  ;;  %v104_v18 = vsel %vm40_vm1, %v56_v12, %v259_v16  ;;  %v261_v21 = vpop.eup %260  ;;  %286 = vpow2.f32 %v101_v2  ;;  %vm54_vm15 = vcmp.gt.f32.partialorder %v38_v63, 0.0 }
  0x21   :  { %v105_v23 = vsel %vm41_vm2, %v57_v19, %v261_v21  ;;  %v263_v26 = vpop.eup %262  ;;  %p316_p9 = pnand %p315_p8, %p309_p5 }
  0x22   :  { %v106_v28 = vsel %vm42_vm3, %v58_v24, %v263_v26  ;;  %v265_v32 = vpop.eup %264 }
  0x23   :  { %v107_v34 = vsel %vm43_vm4, %v59_v29, %v265_v32  ;;  %v267_v37 = vpop.eup %266 }
  0x24   :  { %120 = vxpose.xlu0.b32.cont [2/16] (narrow) %v104_v18, 32  ;;  %v108_v39 = vsel %vm44_vm5, %v60_v35, %v267_v37  ;;  %v269_v42 = vpop.eup %268 }
  0x25   :  { %v109_v44 = vsel %vm45_vm6, %v61_v40, %v269_v42  ;;  %v271_v47 = vpop.eup %270 }
  0x26   :  { %v110_v49 = vsel %vm46_vm7, %v62_v45, %v271_v47  ;;  %v273_v52 = vpop.eup %272 }
  0x27   :  { %v111_v54 = vsel %vm47_vm8, %v63_v50, %v273_v52  ;;  %v275_v57 = vpop.eup %274 }
  0x28   :  { %121 = vxpose.xlu0.b32.cont [3/16] (narrow) %v105_v23, 32  ;;  %v112_v59 = vsel %vm48_vm9, %v64_v55, %v275_v57  ;;  %v277_v62 = vpop.eup %276 }
  0x29   :  { %v113_v0 = vsel %vm49_vm10, %v65_v60, %v277_v62  ;;  %v279_v3 = vpop.eup %278 }
  0x2a   :  { %v114_v4 = vsel %vm50_vm11, %v66_v1, %v279_v3  ;;  %v281_v6 = vpop.eup %280 }
  0x2b   :  { %v115_v7 = vsel %vm51_vm12, %v67_v5, %v281_v6  ;;  %v283_v9 = vpop.eup %282 }
  0x2c   :  { %122 = vxpose.xlu0.b32.cont [4/16] (narrow) %v106_v28, 32  ;;  %v116_v10 = vsel %vm52_vm13, %v68_v8, %v283_v9  ;;  %v285_v12 = vpop.eup %284 }
  0x2d   :  { %v117_v13 = vsel %vm53_vm14, %v69_v11, %v285_v12  ;;  %v287_v15 = vpop.eup %286 }
  0x2e   :  { %v118_v16 = vsel %vm54_vm15, %v70_v14, %v287_v15 }
  0x30   :  { %123 = vxpose.xlu0.b32.cont [5/16] (narrow) %v107_v34, 32 }
  0x34   :  { %124 = vxpose.xlu0.b32.cont [6/16] (narrow) %v108_v39, 32 }
  0x38   :  { %125 = vxpose.xlu0.b32.cont [7/16] (narrow) %v109_v44, 32 }
  0x3c   :  { %126 = vxpose.xlu0.b32.cont [8/16] (narrow) %v110_v49, 32 }
  0x40   :  { %127 = vxpose.xlu0.b32.cont [9/16] (narrow) %v111_v54, 32 }
  0x44   :  { %128 = vxpose.xlu0.b32.cont [10/16] (narrow) %v112_v59, 32 }
  0x48   :  { %129 = vxpose.xlu0.b32.cont [11/16] (narrow) %v113_v0, 32 }
  0x4c   :  { %130 = vxpose.xlu0.b32.cont [12/16] (narrow) %v114_v4, 32 }
  0x50   :  { %131 = vxpose.xlu0.b32.cont [13/16] (narrow) %v115_v7, 32 }
  0x54   :  { %132 = vxpose.xlu0.b32.cont [14/16] (narrow) %v116_v10, 32 }
  0x58   :  { %133 = vxpose.xlu0.b32.cont [15/16] (narrow) %v117_v13, 32 }
  0x5c   :  { %134 = vxpose.xlu0.b32.end [16/16] (narrow) %v118_v16, 32 }
  0x9c   :  { %v135_v17 = vpop.trf.xlu0 }
  0x9d   :  { %218 = vst [vmem:[#allocation5] sm:$0xff] %v135_v17 }
  0xa0   :  { %v136_v18 = vpop.trf.xlu0 }
  0xa1   :  { %219 = vst [vmem:[#allocation5 + $0x8] sm:$0xff] %v136_v18 }
  0xa4   :  { %v137_v19 = vpop.trf.xlu0 }
  0xa5   :  { %220 = vst [vmem:[#allocation5 + $0x10] sm:$0xff] %v137_v19 }
  0xa8   :  { %v138_v20 = vpop.trf.xlu0 }
  0xa9   :  { %221 = vst [vmem:[#allocation5 + $0x18] sm:$0xff] %v138_v20 }
  0xaa   :  { %319 = shalt.err (!%p316_p9)
}
  0xab   :  { %245 = dma.vmem_to_hbm [thread:$0]  %s240_s13, 2048, %s360_s1, [#allocation4], %s333_s9, %s333_s9, %s334_s10  }
  0xac   :  { %330 = dma.done.wait [#allocation4], 2048  }
  0xad   :  { %331 = vsyncadd [#allocation4], 4294965248 }
  0xae   :  { %249 = vsyncpa [#allocation3], 1 }
  0xaf   :  { %250 = vsyncpa [#allocation4], 1 }

</bundles_post_ra>
